<compile_context>
chip_gen: v6e
topology: v6e:2x2x1
jax: 0.10.0
libtpu: 0.0.40
codegen_flags: <defaults>
</compile_context>

<pallas_src>
import math

import jax
import jax.numpy as jnp
from jax.experimental import pallas as pl
from jax.experimental.pallas import tpu as pltpu


def _copy_kernel(x_ref, o_ref):
    # Pure data movement: one lane-dense (TB, F) tile per grid step.
    o_ref[...] = x_ref[...]


def _min_sublane(dtype) -> int:
    # Minimum legal sublane multiple for a tiled block: f32 -> 8, bf16 -> 16,
    # int8/fp8 -> 32 (sub-32-bit dtypes pack along sublanes).
    itemsize = jnp.dtype(dtype).itemsize
    return max(8, 32 // max(itemsize, 1))


def _materialize_copy(x: jax.Array) -> jax.Array:
    """Tiled, software-pipelined identity copy of a (B, F) slab.

    Only used when the caller explicitly wants a materialized copy; the
    default UnFlatten path never calls this.
    """
    B, F = x.shape
    elem = jnp.dtype(x.dtype).itemsize
    sub = _min_sublane(x.dtype)

    # Target ~4 MiB per block buffer.  With Pallas's default double buffering
    # of both input and output (4 buffers total ~16 MiB) this fits the 32 MiB
    # default scoped VMEM on v6e/v7x while staying large enough to amortize
    # the ~0.35 us per-grid-step overhead and keep stores unmasked/lane-dense.
    target_bytes = 4 << 20
    rows_per_block = max(1, target_bytes // max(F * elem, 1))

    if B <= sub or rows_per_block >= B:
        # Full row extent: block shape equal to the array dim is always legal,
        # regardless of divisibility.
        tb = B
    else:
        # Sublane-aligned row tile; F is kept intact (lane-dense, no masked
        # partial stores on the lane axis).
        tb = max(sub, (rows_per_block // sub) * sub)

    grid = (pl.cdiv(B, tb),)
    spec = pl.BlockSpec((tb, F), lambda i: (i, 0))

    return pl.pallas_call(
        _copy_kernel,
        out_shape=jax.ShapeDtypeStruct((B, F), x.dtype),
        grid=grid,
        in_specs=[spec],
        out_specs=spec,
        compiler_params=pltpu.CompilerParams(
            # Row axis is independent -> shard across TensorCores on v7x;
            # measured ~zero cost on single-TC v5e/v6e.
            dimension_semantics=("parallel",),
        ),
    )(x)


def unflatten(x: jax.Array, size: tuple[int, ...], *, materialize: bool = False) -> jax.Array:
    """Equivalent of UnFlatten(size).forward(x).

    x: (B, F) with F == prod(size). Returns (B, *size).

    Default path is a pure metadata reshape (matches torch .view exactly,
    zero HBM traffic).  Set materialize=True to force a real copy through the
    tiled Pallas kernel (e.g., to break aliasing / force a layout).
    """
    B, F = x.shape
    assert math.prod(size) == F, f"size {size} incompatible with flat dim {F}"

    if materialize:
        x = _materialize_copy(x)

    # torch .view() — metadata-only reshape, zero-copy in XLA as well.
    return x.reshape((B, *size))


if __name__ == "__main__":
    key = jax.random.PRNGKey(0)

    # Small shapes consistent with a VAE decoder UnFlatten: size=(C, H, W)=(4, 16, 16)
    B = 2
    size = (4, 16, 16)
    F = math.prod(size)  # 1024

    x = jax.random.normal(key, (B, F), dtype=jnp.float32)
    expected = x.reshape((B, *size))

    # Default path: pure view/reshape (what the PyTorch module does).
    out_view = jax.block_until_ready(unflatten(x, size))
    assert out_view.shape == (B, *size), out_view.shape
    assert out_view.dtype == x.dtype
    assert bool(jnp.array_equal(out_view, expected))

    # Optional materialized path: exercises the tiled Pallas copy kernel.
    out_copy = jax.block_until_ready(unflatten(x, size, materialize=True))
    assert out_copy.shape == (B, *size), out_copy.shape
    assert out_copy.dtype == x.dtype
    assert bool(jnp.array_equal(out_copy, expected))

    print("KERNEL_OK")
</pallas_src>

<mosaic_0001>
module attributes {stable_mosaic.version = 11 : i64} {
  func.func @_copy_kernel(%arg0: i32, %arg1: memref<2x1024xf32, #tpu.memory_space<vmem>>, %arg2: memref<2x1024xf32, #tpu.memory_space<vmem>>) attributes {dimension_semantics = [#tpu.dimension_semantics<parallel>], iteration_bounds = array<i64: 1>, scalar_prefetch = 0 : i64, scratch_operands = 0 : i64, tpu.core_type = #tpu.core_type<tc>, window_params = [{transform_indices = @transform_0, window_bounds = array<i64: 2, 1024>}, {transform_indices = @transform_1, window_bounds = array<i64: 2, 1024>}]} {
    %c0 = arith.constant 0 : index
    %c0_0 = arith.constant 0 : index
    %0 = vector.load %arg1[%c0, %c0_0] : memref<2x1024xf32, #tpu.memory_space<vmem>>, vector<2x1024xf32>
    %c0_1 = arith.constant 0 : index
    %c0_2 = arith.constant 0 : index
    %1 = vector.load %arg2[%c0_1, %c0_2] : memref<2x1024xf32, #tpu.memory_space<vmem>>, vector<2x1024xf32>
    tpu.vector_store %arg2[%c0_1, %c0_2], %0 {strides = array<i32>} : memref<2x1024xf32, #tpu.memory_space<vmem>>, vector<2x1024xf32>,
    return
  }
  func.func @transform_0(%arg0: i32) -> (i32, i32) {
    %c0_i32 = arith.constant 0 : i32
    %c0_i32_0 = arith.constant 0 : i32
    return %arg0, %c0_i32 : i32, i32
  }
  func.func @transform_1(%arg0: i32) -> (i32, i32) {
    %c0_i32 = arith.constant 0 : i32
    %c0_i32_0 = arith.constant 0 : i32
    return %arg0, %c0_i32 : i32, i32
  }
}

</mosaic_0001>

<bundles_post_ra>
// kernel: tpu_custom_call.1
= control target key start
LH: loop header
LB: loop body
LE: loop exit
PB: predicated region body
PF: predicated region fallthrough
CT: control target
= control target key end

     0   :  { %6 = vsyncpa [#allocation3], 0  ;;  %s104_s0 = inlined_call_operand.hbm [shape: f32[2,1024], index: 0, kind: input, shape index: {}]   ;;  %s105_s1 = inlined_call_operand.hbm [shape: f32[2,1024], index: 1, kind: output, shape index: {}]  }
   0x1   :  { %7 = vsyncpa [#allocation4], 0  ;;  %s86_s6 = smov [#allocation2]  }
   0x2   :  { %s14_s7 = sshll.u32 %s86_s6, 4  ;;  %s15_s7 = int_to_ptr.vmem [resolvable:$true] %s14_s7 }
   0x3   :  { %s50_s8 = scalar_lea.vmem %s15_s7, 256  ;;  %p55_p1 = scmp.lt.s32.totalorder %s15_s7, %s15_s7 }
   0x4   :  { %p51_p0 = scmp.ne.s32.totalorder %s15_s7, %s50_s8  ;;  %p56_p2 = scmp.lt.s32.totalorder %s50_s8, %s50_s8 }
   0x6   :  { %p57_p3 = por %p56_p2, %p55_p1 }
   0x8   :  { %p58_p4 = pnand %p57_p3, %p51_p0 }
   0xa   :  { %61 = shalt.err (!%p58_p4)
}
   0xb   :  { %17 = dma.hbm_to_vmem [thread:$0]  %s104_s0, 256, %s15_s7, [#allocation3]  }
   0xc   :  { %82 = dma.done.wait [#allocation3], 256  }
   0xd   :  { %83 = vsyncadd [#allocation3], 4294967040  ;;  %s87_s11 = smov [#allocation5]   ;;  %v21_v0 = vld [vmem:[#allocation2] sm:$0xff]  ;;  %v22_v1 = vld [vmem:[#allocation2 + $0x8] sm:$0xff] }
   0xe   :  { %s31_s12 = sshll.u32 %s87_s11, 4  ;;  %23 = vst [vmem:[#allocation5] sm:$0xff] %v21_v0  ;;  %24 = vst [vmem:[#allocation5 + $0x8] sm:$0xff] %v22_v1  ;;  %s32_s12 = int_to_ptr.vmem [resolvable:$true] %s31_s12 }
   0xf   :  { %s62_s13 = scalar_lea.vmem %s32_s12, 256  ;;  %p67_p6 = scmp.lt.s32.totalorder %s32_s12, %s32_s12 }
  0x10   :  { %p63_p5 = scmp.ne.s32.totalorder %s32_s12, %s62_s13  ;;  %p68_p7 = scmp.lt.s32.totalorder %s62_s13, %s62_s13 }
  0x12   :  { %p69_p8 = por %p68_p7, %p67_p6 }
  0x14   :  { %p70_p9 = pnand %p69_p8, %p63_p5 }
  0x16   :  { %73 = shalt.err (!%p70_p9)
}
  0x17   :  { %34 = dma.vmem_to_hbm [thread:$0]  %s32_s12, 256, %s105_s1, [#allocation4]  }
  0x18   :  { %84 = dma.done.wait [#allocation4], 256  }
  0x19   :  { %85 = vsyncadd [#allocation4], 4294967040 }
  0x1a   :  { %38 = vsyncpa [#allocation3], 1 }
  0x1b   :  { %39 = vsyncpa [#allocation4], 1 }

</bundles_post_ra>
